<compile_context>
chip_gen: v7x
topology: tpu7x:2x2x1
jax: 0.10.0
libtpu: 0.0.40
codegen_flags: <defaults>
</compile_context>

<pallas_src>
import jax
import jax.numpy as jnp
from jax.experimental import pallas as pl
from jax.experimental.pallas import tpu as pltpu


# --------------------------------------------------------------------------
# Preferred path: a true identity does no data movement at all.
# --------------------------------------------------------------------------
def dummy_forward(x: jax.Array) -> jax.Array:
    """Dummy.forward (identity).  Zero-copy: returns the input unchanged."""
    return x


# --------------------------------------------------------------------------
# Pallas copy path: direct HBM->HBM DMA (only if a distinct output buffer is
# explicitly needed).  Pure copies are DMA-engine work, not TensorCore work.
# --------------------------------------------------------------------------
_MAX_CHUNKS = 4
_CHUNK_THRESHOLD_BYTES = 4 << 20   # only bother chunking tensors >= 4 MiB


def _choose_chunks(leading: int, total_bytes: int):
    """Static (start, size) chunks along the leading axis."""
    if leading < 2 or total_bytes < _CHUNK_THRESHOLD_BYTES:
        return [(0, leading)]
    n = min(_MAX_CHUNKS, leading)
    base, rem = divmod(leading, n)
    chunks, start = [], 0
    for c in range(n):
        size = base + (1 if c < rem else 0)
        chunks.append((start, size))
        start += size
    return chunks


def _make_dma_copy_kernel(chunks):
    def kernel(x_hbm, o_hbm, sems):
        copies = [
            pltpu.make_async_copy(
                x_hbm.at[pl.ds(start, size)],
                o_hbm.at[pl.ds(start, size)],
                sems.at[i],
            )
            for i, (start, size) in enumerate(chunks)
        ]
        for cp in copies:      # issue all DMAs back-to-back
            cp.start()
        for cp in copies:      # then wait for completion
            cp.wait()
    return kernel


def dummy_forward_pallas(x: jax.Array) -> jax.Array:
    """Identity implemented as a direct HBM->HBM async-DMA copy."""
    if x.size == 0:
        return x
    orig_shape = x.shape
    if x.ndim == 0:
        x = x.reshape(1)

    total_bytes = x.size * jnp.dtype(x.dtype).itemsize
    chunks = _choose_chunks(x.shape[0], total_bytes)

    out = pl.pallas_call(
        _make_dma_copy_kernel(chunks),
        out_shape=jax.ShapeDtypeStruct(x.shape, x.dtype),
        in_specs=[pl.BlockSpec(memory_space=pl.ANY)],     # raw HBM ref, no auto-DMA
        out_specs=pl.BlockSpec(memory_space=pl.ANY),      # DMA straight into output
        scratch_shapes=[pltpu.SemaphoreType.DMA((len(chunks),))],
        cost_estimate=pl.CostEstimate(
            flops=0, transcendentals=0, bytes_accessed=2 * total_bytes),
    )(x)
    return out.reshape(orig_shape)


if __name__ == "__main__":
    key = jax.random.PRNGKey(0)
    # NCHW-style input, small shapes: batch=2, channels=4, spatial=16x16.
    x = jax.random.normal(key, (2, 4, 16, 16), dtype=jnp.float32)

    # Preferred zero-copy identity.
    y0 = dummy_forward(x)
    assert y0.shape == x.shape and y0.dtype == x.dtype
    assert bool(jnp.all(y0 == x))

    # Pallas copy path: small input -> single HBM->HBM DMA.
    y1 = jax.block_until_ready(dummy_forward_pallas(x))
    assert y1.shape == x.shape and y1.dtype == x.dtype
    assert bool(jnp.all(y1 == x))

    # Larger input (4 MiB f32) -> 4 chunked DMAs along the leading axis.
    x_big = jax.random.normal(jax.random.PRNGKey(1), (8, 32, 64, 64), jnp.float32)
    y_big = jax.block_until_ready(dummy_forward_pallas(x_big))
    assert bool(jnp.all(y_big == x_big))

    # Non-128-multiple / ragged shape: exact-shape DMA, no padding or slicing.
    x_odd = jax.random.normal(jax.random.PRNGKey(2), (7, 11, 13), jnp.float32)
    y_odd = jax.block_until_ready(dummy_forward_pallas(x_odd))
    assert bool(jnp.all(y_odd == x_odd))

    # Sub-32-bit dtype path (bf16).
    x_bf16 = jax.random.normal(jax.random.PRNGKey(3), (2, 4, 16, 16),
                               jnp.float32).astype(jnp.bfloat16)
    y_bf16 = jax.block_until_ready(dummy_forward_pallas(x_bf16))
    assert y_bf16.dtype == jnp.bfloat16
    assert bool(jnp.all(y_bf16 == x_bf16))

    print("KERNEL_OK")
</pallas_src>

<mosaic_0001>
module attributes {stable_mosaic.version = 11 : i64} {
  func.func @kernel(%arg0: memref<2x4x16x16xf32, #tpu.memory_space<any>>, %arg1: memref<2x4x16x16xf32, #tpu.memory_space<any>>, %arg2: memref<1x!tpu.dma_semaphore, #tpu.memory_space<semaphore_mem>>) attributes {dimension_semantics = [], scalar_prefetch = 0 : i64, scratch_operands = 1 : i64, tpu.core_type = #tpu.core_type<tc>} {
    %c0_i32 = arith.constant 0 : i32
    %c0_i32_0 = arith.constant 0 : i32
    %c0_i32_1 = arith.constant 0 : i32
    %c0_i32_2 = arith.constant 0 : i32
    %c0_i32_3 = arith.constant 0 : i32
    %0 = tpu.memref_slice %arg0[%c0_i32_0, %c0_i32_1, %c0_i32_2, %c0_i32_3] : memref<2x4x16x16xf32, #tpu.memory_space<any>> -> memref<2x4x16x16xf32, #tpu.memory_space<any>>
    %c0_i32_4 = arith.constant 0 : i32
    %c0_i32_5 = arith.constant 0 : i32
    %c0_i32_6 = arith.constant 0 : i32
    %c0_i32_7 = arith.constant 0 : i32
    %1 = tpu.memref_slice %arg1[%c0_i32_4, %c0_i32_5, %c0_i32_6, %c0_i32_7] : memref<2x4x16x16xf32, #tpu.memory_space<any>> -> memref<2x4x16x16xf32, #tpu.memory_space<any>>
    %2 = tpu.memref_slice %arg2[%c0_i32] : memref<1x!tpu.dma_semaphore, #tpu.memory_space<semaphore_mem>> -> memref<1x!tpu.dma_semaphore, #tpu.memory_space<semaphore_mem>>
    %3 = tpu.memref_squeeze %2 : memref<1x!tpu.dma_semaphore, #tpu.memory_space<semaphore_mem>> -> memref<!tpu.dma_semaphore, #tpu.memory_space<semaphore_mem>>
    tpu.enqueue_dma source(%0 : memref<2x4x16x16xf32, #tpu.memory_space<any>>) target(%1 : memref<2x4x16x16xf32, #tpu.memory_space<any>>) target_semaphore(%3 : memref<!tpu.dma_semaphore, #tpu.memory_space<semaphore_mem>>)
    %c0_i32_8 = arith.constant 0 : i32
    %c0_i32_9 = arith.constant 0 : i32
    %c0_i32_10 = arith.constant 0 : i32
    %c0_i32_11 = arith.constant 0 : i32
    %c0_i32_12 = arith.constant 0 : i32
    %4 = tpu.memref_slice %arg0[%c0_i32_9, %c0_i32_10, %c0_i32_11, %c0_i32_12] : memref<2x4x16x16xf32, #tpu.memory_space<any>> -> memref<2x4x16x16xf32, #tpu.memory_space<any>>
    %c0_i32_13 = arith.constant 0 : i32
    %c0_i32_14 = arith.constant 0 : i32
    %c0_i32_15 = arith.constant 0 : i32
    %c0_i32_16 = arith.constant 0 : i32
    %5 = tpu.memref_slice %arg1[%c0_i32_13, %c0_i32_14, %c0_i32_15, %c0_i32_16] : memref<2x4x16x16xf32, #tpu.memory_space<any>> -> memref<2x4x16x16xf32, #tpu.memory_space<any>>
    %6 = tpu.memref_slice %arg2[%c0_i32_8] : memref<1x!tpu.dma_semaphore, #tpu.memory_space<semaphore_mem>> -> memref<1x!tpu.dma_semaphore, #tpu.memory_space<semaphore_mem>>
    %7 = tpu.memref_squeeze %6 : memref<1x!tpu.dma_semaphore, #tpu.memory_space<semaphore_mem>> -> memref<!tpu.dma_semaphore, #tpu.memory_space<semaphore_mem>>
    tpu.wait_dma2 semaphore(%7 : memref<!tpu.dma_semaphore, #tpu.memory_space<semaphore_mem>>) src(%4 : memref<2x4x16x16xf32, #tpu.memory_space<any>>) dst(%5 : memref<2x4x16x16xf32, #tpu.memory_space<any>>)
    return
  }
}

</mosaic_0001>

<bundles_post_ra>
// kernel: tpu_custom_call.1
= control target key start
LH: loop header
LB: loop body
LE: loop exit
PB: predicated region body
PF: predicated region fallthrough
CT: control target
= control target key end

     0   :  { %s36_s6 = smov [#allocation2]   ;;  %s37_s7 = smov [#allocation3]   ;;  %s55_s0 = inlined_call_operand.hbm [shape: f32[2,4,16,16], index: 0, kind: input, shape index: {}]   ;;  %s56_s1 = inlined_call_operand.hbm [shape: f32[2,4,16,16], index: 1, kind: output, shape index: {}]  }
   0x1   :  { %s38_s8 = smov 0  }
   0x2   :  { %18 = dma.general %s55_s0, 2048, %s56_s1, %s36_s6, %s37_s7, [#allocation4], %s38_s8, 0  }
   0x3   :  { %34 = dma.done.wait [#allocation2], 2048 }
   0x4   :  { %35 = vsyncadd [#allocation2], 4294965248 }
   0x5   :  { %24 = vsyncmov [#allocation2] }
   0x8   :  { %s25_s13 = vpop.sfrf %24 }
   0x9   :  { %p30_p0 = scmp.ne.s32.totalorder %s25_s13, 0 }
   0xb   :  { %29 = shalt.err (%p30_p0)  }

</bundles_post_ra>
